<compile_context>
chip_gen: v6e
topology: v6e:2x2x1
jax: 0.10.0
libtpu: 0.0.40
codegen_flags: <defaults>
</compile_context>

<pallas_src>
import jax
import jax.numpy as jnp
from jax import lax
from jax.experimental import pallas as pl
from jax.experimental.pallas import tpu as pltpu

LANE = 128
SUBLANE = 8


def _round_up(n: int, m: int) -> int:
    return ((n + m - 1) // m) * m


def actor_mlp_kernel(x_ref, w1_ref, b1_ref, w2_ref, b2_ref, w3_ref, b3_ref, o_ref):
    # fc1 + ReLU: f32 input tile cast to bf16 in-kernel, f32 MXU accumulation.
    x = x_ref[...].astype(jnp.bfloat16)                                   # (tile, S)
    h1 = jnp.dot(x, w1_ref[...], preferred_element_type=jnp.float32) + b1_ref[...]
    h1 = jnp.maximum(h1, 0.0).astype(jnp.bfloat16)                        # (tile, H1)
    # fc2 + ReLU
    h2 = jnp.dot(h1, w2_ref[...], preferred_element_type=jnp.float32) + b2_ref[...]
    h2 = jnp.maximum(h2, 0.0).astype(jnp.bfloat16)                        # (tile, H2)
    # fc3 + tanh, computed transposed: (A_pad, H2) x (tile, H2)^T -> (A_pad, tile).
    # Batch maps to lanes, so the output store is lane-dense and tanh runs on
    # only A_pad sublanes per 128 batch rows.
    out_t = lax.dot_general(
        w3_ref[...], h2,
        dimension_numbers=(((1,), (1,)), ((), ())),
        preferred_element_type=jnp.float32,
    ) + b3_ref[...]                                                       # (A_pad, tile)
    o_ref[...] = jnp.tanh(out_t).astype(o_ref.dtype)


def actor_network_forward(state, params, *, action_size=1, batch_tile=1024):
    """state: (B, state_size) float32. Returns (B, action_size) float32."""
    w1, b1, w2, b2, w3t, b3t = params
    B, state_size = state.shape
    assert w1.shape[0] == state_size
    a_pad = w3t.shape[0]

    # Batch tile: multiple of 128 (output is batch-on-lanes); aim for >= 2 grid
    # steps so v7x's second TensorCore gets work, without over-padding batch.
    batch_tile = _round_up(batch_tile, LANE)
    tile = min(batch_tile, max(LANE, _round_up(pl.cdiv(B, 2), LANE)))
    B_pad = _round_up(B, tile)
    x = state if B_pad == B else jnp.pad(state, ((0, B_pad - B), (0, 0)))

    grid = (B_pad // tile,)

    flops = 2 * B_pad * (w1.shape[0] * w1.shape[1]
                         + w2.shape[0] * w2.shape[1]
                         + w3t.shape[0] * w3t.shape[1])
    bytes_accessed = (x.size * x.dtype.itemsize
                      + sum(int(p.size) * p.dtype.itemsize for p in params)
                      + a_pad * B_pad * 4)

    out_t = pl.pallas_call(
        actor_mlp_kernel,
        out_shape=jax.ShapeDtypeStruct((a_pad, B_pad), jnp.float32),
        grid=grid,
        in_specs=[
            pl.BlockSpec((tile, state_size), lambda i: (i, 0)),  # x: pipelined per batch tile
            pl.BlockSpec(w1.shape, lambda i: (0, 0)),            # params: VMEM-resident
            pl.BlockSpec(b1.shape, lambda i: (0, 0)),
            pl.BlockSpec(w2.shape, lambda i: (0, 0)),
            pl.BlockSpec(b2.shape, lambda i: (0, 0)),
            pl.BlockSpec(w3t.shape, lambda i: (0, 0)),
            pl.BlockSpec(b3t.shape, lambda i: (0, 0)),
        ],
        out_specs=pl.BlockSpec((a_pad, tile), lambda i: (0, i)),
        compiler_params=pltpu.CompilerParams(
            dimension_semantics=("parallel",),
        ),
        cost_estimate=pl.CostEstimate(
            flops=flops,
            transcendentals=a_pad * B_pad,
            bytes_accessed=bytes_accessed,
        ),
    )(x, w1, b1, w2, b2, w3t, b3t)

    # (A_pad, B_pad) -> (B, action_size)
    return out_t[:action_size, :B].T


def init_params(key, state_size=32, action_size=1, hidden1=64, hidden2=32):
    """PyTorch nn.Linear-style init (uniform +-1/sqrt(fan_in)).
    fc1/fc2 stored (in, out) bf16 for x @ W; fc3 stored transposed and
    sublane-padded (A_pad, hidden2) bf16 for the lane-major output. Biases f32."""
    a_pad = _round_up(max(action_size, 1), SUBLANE)
    k1, k2, k3, k4, k5, k6 = jax.random.split(key, 6)

    def uni(k, shape, fan_in):
        bound = float(fan_in) ** -0.5
        return jax.random.uniform(k, shape, jnp.float32, -bound, bound)

    w1 = uni(k1, (state_size, hidden1), state_size)
    b1 = uni(k2, (1, hidden1), state_size)
    w2 = uni(k3, (hidden1, hidden2), hidden1)
    b2 = uni(k4, (1, hidden2), hidden1)
    w3 = uni(k5, (hidden2, action_size), hidden2)
    b3 = uni(k6, (1, action_size), hidden2)

    w3t = jnp.zeros((a_pad, hidden2), jnp.float32).at[:action_size, :].set(w3.T)
    b3t = jnp.zeros((a_pad, 1), jnp.float32).at[:action_size, :].set(b3.T)

    return (w1.astype(jnp.bfloat16), b1,
            w2.astype(jnp.bfloat16), b2,
            w3t.astype(jnp.bfloat16), b3t)


def reference_forward(state, params, *, action_size=1):
    """Pure-JAX f32 reference using the same (bf16-quantized) weights."""
    w1, b1, w2, b2, w3t, b3t = params
    h1 = jnp.maximum(state @ w1.astype(jnp.float32) + b1, 0.0)
    h2 = jnp.maximum(h1 @ w2.astype(jnp.float32) + b2, 0.0)
    out = jnp.tanh(h2 @ w3t.astype(jnp.float32).T + b3t.T)
    return out[:, :action_size]


if __name__ == "__main__":
    key = jax.random.PRNGKey(0)
    key, kstate = jax.random.split(key)

    batch = 8
    state_size = 32
    action_size = 1

    state = jax.random.normal(kstate, (batch, state_size), jnp.float32)
    params = init_params(key, state_size=state_size, action_size=action_size)

    out = actor_network_forward(state, params, action_size=action_size)
    out = jax.block_until_ready(out)

    ref = reference_forward(state, params, action_size=action_size)
    assert out.shape == (batch, action_size), out.shape
    # bf16 matmul feed vs f32 reference activations -> relaxed tolerance
    assert jnp.allclose(out, ref, atol=2e-2, rtol=2e-2), (out, ref)

    print("KERNEL_OK")
</pallas_src>

<mosaic_0001>
module attributes {stable_mosaic.version = 11 : i64} {
  func.func @actor_mlp_kernel(%arg0: i32, %arg1: memref<128x32xf32, #tpu.memory_space<vmem>>, %arg2: memref<32x64xbf16, #tpu.memory_space<vmem>>, %arg3: memref<1x64xf32, #tpu.memory_space<vmem>>, %arg4: memref<64x32xbf16, #tpu.memory_space<vmem>>, %arg5: memref<1x32xf32, #tpu.memory_space<vmem>>, %arg6: memref<8x32xbf16, #tpu.memory_space<vmem>>, %arg7: memref<8x1xf32, #tpu.memory_space<vmem>>, %arg8: memref<8x128xf32, #tpu.memory_space<vmem>>) attributes {dimension_semantics = [#tpu.dimension_semantics<parallel>], iteration_bounds = array<i64: 1>, scalar_prefetch = 0 : i64, scratch_operands = 0 : i64, tpu.core_type = #tpu.core_type<tc>, window_params = [{transform_indices = @transform_0, window_bounds = array<i64: 128, 32>}, {pipeline_mode = #tpu.pipeline_mode<synchronous>, transform_indices = @transform_1, window_bounds = array<i64: 32, 64>}, {pipeline_mode = #tpu.pipeline_mode<synchronous>, transform_indices = @transform_2, window_bounds = array<i64: 1, 64>}, {pipeline_mode = #tpu.pipeline_mode<synchronous>, transform_indices = @transform_3, window_bounds = array<i64: 64, 32>}, {pipeline_mode = #tpu.pipeline_mode<synchronous>, transform_indices = @transform_4, window_bounds = array<i64: 1, 32>}, {pipeline_mode = #tpu.pipeline_mode<synchronous>, transform_indices = @transform_5, window_bounds = array<i64: 8, 32>}, {pipeline_mode = #tpu.pipeline_mode<synchronous>, transform_indices = @transform_6, window_bounds = array<i64: 8, 1>}, {transform_indices = @transform_7, window_bounds = array<i64: 8, 128>}]} {
    %c0 = arith.constant 0 : index
    %c0_0 = arith.constant 0 : index
    %0 = vector.load %arg1[%c0, %c0_0] : memref<128x32xf32, #tpu.memory_space<vmem>>, vector<128x32xf32>
    %1 = arith.truncf %0 : vector<128x32xf32> to vector<128x32xbf16>
    %c0_1 = arith.constant 0 : index
    %c0_2 = arith.constant 0 : index
    %2 = vector.load %arg2[%c0_1, %c0_2] : memref<32x64xbf16, #tpu.memory_space<vmem>>, vector<32x64xbf16>
    %cst = arith.constant dense<0.000000e+00> : vector<128x64xf32>
    %3 = tpu.matmul %1, %2, %cst {dimension_numbers = #tpu.dot_dimension_numbers<[1], [0], [0], [1], [0, 0, 1, 1], [], []>} : vector<128x32xbf16>, vector<32x64xbf16>, vector<128x64xf32> -> vector<128x64xf32>
    %c0_3 = arith.constant 0 : index
    %c0_4 = arith.constant 0 : index
    %4 = vector.load %arg3[%c0_3, %c0_4] : memref<1x64xf32, #tpu.memory_space<vmem>>, vector<1x64xf32>
    %5 = vector.broadcast %4 : vector<1x64xf32> to vector<128x64xf32>
    %6 = arith.addf %3, %5 : vector<128x64xf32>
    %cst_5 = arith.constant 0.000000e+00 : f32
    %7 = vector.broadcast %cst_5 : f32 to vector<128x64xf32>
    %8 = arith.maximumf %6, %7 : vector<128x64xf32>
    %9 = arith.truncf %8 : vector<128x64xf32> to vector<128x64xbf16>
    %c0_6 = arith.constant 0 : index
    %c0_7 = arith.constant 0 : index
    %10 = vector.load %arg4[%c0_6, %c0_7] : memref<64x32xbf16, #tpu.memory_space<vmem>>, vector<64x32xbf16>
    %cst_8 = arith.constant dense<0.000000e+00> : vector<128x32xf32>
    %11 = tpu.matmul %9, %10, %cst_8 {dimension_numbers = #tpu.dot_dimension_numbers<[1], [0], [0], [1], [0, 0, 1, 1], [], []>} : vector<128x64xbf16>, vector<64x32xbf16>, vector<128x32xf32> -> vector<128x32xf32>
    %c0_9 = arith.constant 0 : index
    %c0_10 = arith.constant 0 : index
    %12 = vector.load %arg5[%c0_9, %c0_10] : memref<1x32xf32, #tpu.memory_space<vmem>>, vector<1x32xf32>
    %13 = vector.broadcast %12 : vector<1x32xf32> to vector<128x32xf32>
    %14 = arith.addf %11, %13 : vector<128x32xf32>
    %cst_11 = arith.constant 0.000000e+00 : f32
    %15 = vector.broadcast %cst_11 : f32 to vector<128x32xf32>
    %16 = arith.maximumf %14, %15 : vector<128x32xf32>
    %17 = arith.truncf %16 : vector<128x32xf32> to vector<128x32xbf16>
    %c0_12 = arith.constant 0 : index
    %c0_13 = arith.constant 0 : index
    %18 = vector.load %arg6[%c0_12, %c0_13] : memref<8x32xbf16, #tpu.memory_space<vmem>>, vector<8x32xbf16>
    %cst_14 = arith.constant dense<0.000000e+00> : vector<8x128xf32>
    %19 = tpu.matmul %18, %17, %cst_14 {dimension_numbers = #tpu.dot_dimension_numbers<[1], [1], [0], [0], [0, 0, 1, 0], [], []>} : vector<8x32xbf16>, vector<128x32xbf16>, vector<8x128xf32> -> vector<8x128xf32>
    %c0_15 = arith.constant 0 : index
    %c0_16 = arith.constant 0 : index
    %20 = vector.load %arg7[%c0_15, %c0_16] : memref<8x1xf32, #tpu.memory_space<vmem>>, vector<8x1xf32>
    %21 = vector.broadcast %20 : vector<8x1xf32> to vector<8x128xf32>
    %22 = arith.addf %19, %21 : vector<8x128xf32>
    %23 = math.tanh %22 : vector<8x128xf32>
    %c0_17 = arith.constant 0 : index
    %c0_18 = arith.constant 0 : index
    %24 = vector.load %arg8[%c0_17, %c0_18] : memref<8x128xf32, #tpu.memory_space<vmem>>, vector<8x128xf32>
    tpu.vector_store %arg8[%c0_17, %c0_18], %23 {strides = array<i32>} : memref<8x128xf32, #tpu.memory_space<vmem>>, vector<8x128xf32>,
    return
  }
  func.func @transform_0(%arg0: i32) -> (i32, i32) {
    %c0_i32 = arith.constant 0 : i32
    %c0_i32_0 = arith.constant 0 : i32
    return %arg0, %c0_i32 : i32, i32
  }
  func.func @transform_1(%arg0: i32) -> (i32, i32) {
    %c0_i32 = arith.constant 0 : i32
    %c0_i32_0 = arith.constant 0 : i32
    %c0_i32_1 = arith.constant 0 : i32
    return %c0_i32, %c0_i32_0 : i32, i32
  }
  func.func @transform_2(%arg0: i32) -> (i32, i32) {
    %c0_i32 = arith.constant 0 : i32
    %c0_i32_0 = arith.constant 0 : i32
    %c0_i32_1 = arith.constant 0 : i32
    return %c0_i32, %c0_i32_0 : i32, i32
  }
  func.func @transform_3(%arg0: i32) -> (i32, i32) {
    %c0_i32 = arith.constant 0 : i32
    %c0_i32_0 = arith.constant 0 : i32
    %c0_i32_1 = arith.constant 0 : i32
    return %c0_i32, %c0_i32_0 : i32, i32
  }
  func.func @transform_4(%arg0: i32) -> (i32, i32) {
    %c0_i32 = arith.constant 0 : i32
    %c0_i32_0 = arith.constant 0 : i32
    %c0_i32_1 = arith.constant 0 : i32
    return %c0_i32, %c0_i32_0 : i32, i32
  }
  func.func @transform_5(%arg0: i32) -> (i32, i32) {
    %c0_i32 = arith.constant 0 : i32
    %c0_i32_0 = arith.constant 0 : i32
    %c0_i32_1 = arith.constant 0 : i32
    return %c0_i32, %c0_i32_0 : i32, i32
  }
  func.func @transform_6(%arg0: i32) -> (i32, i32) {
    %c0_i32 = arith.constant 0 : i32
    %c0_i32_0 = arith.constant 0 : i32
    %c0_i32_1 = arith.constant 0 : i32
    return %c0_i32, %c0_i32_0 : i32, i32
  }
  func.func @transform_7(%arg0: i32) -> (i32, i32) {
    %c0_i32 = arith.constant 0 : i32
    %c0_i32_0 = arith.constant 0 : i32
    return %c0_i32, %arg0 : i32, i32
  }
}

</mosaic_0001>

<bundles_post_ra>
// kernel: tpu_custom_call.1
= control target key start
LH: loop header
LB: loop body
LE: loop exit
PB: predicated region body
PF: predicated region fallthrough
CT: control target
= control target key end

     0   :  { %vm75_vm0 = vcmask 261120   ;;  %s828_s0 = inlined_call_operand.vmem [shape: f32[128,32], index: 0, kind: input, shape index: {}]   ;;  %s829_s1 = inlined_call_operand.vmem [shape: bf16[32,64], index: 1, kind: input, shape index: {}]   ;;  %s830_s2 = inlined_call_operand.vmem [shape: f32[1,64], index: 2, kind: input, shape index: {}]   ;;  %s831_s3 = inlined_call_operand.vmem [shape: bf16[64,32], index: 3, kind: input, shape index: {}]   ;;  %s832_s4 = inlined_call_operand.vmem [shape: f32[1,32], index: 4, kind: input, shape index: {}]   ;;  %s833_s5 = inlined_call_operand.vmem [shape: bf16[8,32], index: 5, kind: input, shape index: {}]   ;;  %s834_s6 = inlined_call_operand.vmem [shape: f32[8,1], index: 6, kind: input, shape index: {}]   ;;  %s835_s7 = inlined_call_operand.hbm [shape: f32[8,128], index: 7, kind: output, shape index: {}]  }
   0x1   :  { %v621_v0 = vld [vmem:[%s829_s1 + $0x8] sm:$0xff]   ;;  %v622_v1 = vld [vmem:[%s829_s1] sm:$0xff]   ;;  %v30_v5 = vld [vmem:[%s828_s0 + $0x10] sm:$0xff] }
   0x2   :  { %552 = vmatprep.subr.bf16.mxu1 %v621_v0  ;;  %v28_v2 = vld [vmem:[%s828_s0] sm:$0xff]  ;;  %v29_v3 = vld [vmem:[%s828_s0 + $0x8] sm:$0xff]  ;;  %v31_v6 = vld [vmem:[%s828_s0 + $0x18] sm:$0xff] }
   0x3   :  { %553 = vmatpush3.bf16.msra.mxu1 %v621_v0  ;;  %v44_v4 = vpack.c.bf16 %v29_v3, %v28_v2  ;;  %v32_v7 = vld [vmem:[%s828_s0 + $0x20] sm:$0xff]  ;;  %v33_v8 = vld [vmem:[%s828_s0 + $0x28] sm:$0xff]  ;;  %v45_v9 = vpack.c.bf16 %v31_v6, %v30_v5  ;;  %v623_v11 = vld [vmem:[%s831_s3 + $0x18] sm:$0xff]  }
   0x4   :  { %554 = vmatprep.subr.bf16.mxu1 %v622_v1  ;;  %v46_v10 = vpack.c.bf16 %v33_v8, %v32_v7  ;;  %v624_v12 = vld [vmem:[%s831_s3 + $0x10] sm:$0xff]   ;;  %v35_v14 = vld [vmem:[%s828_s0 + $0x38] sm:$0xff] }
   0x5   :  { %556 = vmatprep.mubr.msk.bf16.mxu1 %vm75_vm0, %v44_v4  ;;  %v34_v13 = vld [vmem:[%s828_s0 + $0x30] sm:$0xff] }
   0x7   :  { %555 = vmatpush3.bf16.msra.mxu1 %v622_v1 }
   0x8   :  { %572 = vmatprep.subr.bf16.mxu1 %v623_v11 }
   0xa   :  { %557 = vmatmul.mubr.msk.bf16.vlgmr.msra.gmra.mxu1 %vm75_vm0, %v45_v9 }
   0xb   :  { %560 = vmatprep.mubr.msk.bf16.mxu1 %vm75_vm0, %v46_v10  ;;  %573 = vmatpush3.bf16.msra.mxu1 %v623_v11 }
   0xc   :  { %12 = vsyncpa [#allocation3], 0  ;;  %v36_v15 = vld [vmem:[%s828_s0 + $0x40] sm:$0xff]  ;;  %v37_v16 = vld [vmem:[%s828_s0 + $0x48] sm:$0xff]  ;;  %574 = vmatprep.subr.bf16.mxu1 %v624_v12  ;;  %v47_v18 = vpack.c.bf16 %v35_v14, %v34_v13  ;;  %vm260_vm1 = vcmask 523264   ;;  %vm652_vm2 = vmmov 0  }
   0xd   :  { %v625_v17 = vld [vmem:[%s831_s3 + $0x8] sm:$0xff]   ;;  %v48_v19 = vpack.c.bf16 %v37_v16, %v36_v15  ;;  %v38_v20 = vld [vmem:[%s828_s0 + $0x50] sm:$0xff]  ;;  %v39_v21 = vld [vmem:[%s828_s0 + $0x58] sm:$0xff]  ;;  %s654_s23 = smov [#allocation2]  }
   0xe   :  { %v40_v22 = vld [vmem:[%s828_s0 + $0x60] sm:$0xff]  ;;  %v41_v23 = vld [vmem:[%s828_s0 + $0x68] sm:$0xff]  ;;  %v49_v24 = vpack.c.bf16 %v39_v21, %v38_v20  ;;  %v42_v26 = vld [vmem:[%s828_s0 + $0x70] sm:$0xff]  ;;  %s488_s24 = sshll.u32 %s654_s23, 4  ;;  %s489_s24 = int_to_ptr.vmem [resolvable:$true] %s488_s24 }
   0xf   :  { %575 = vmatpush3.bf16.msra.mxu1 %v624_v12  ;;  %v50_v25 = vpack.c.bf16 %v41_v23, %v40_v22  ;;  %v43_v27 = vld [vmem:[%s828_s0 + $0x78] sm:$0xff]  ;;  %v626_v29 = vld [vmem:[%s831_s3] sm:$0xff]   ;;  %v651_v23 = vmov 0.0   ;;  %s629_s25 = scalar_lea.vmem %s489_s24, 128  ;;  %p634_p1 = scmp.lt.s32.totalorder %s489_s24, %s489_s24 }
  0x10   :  { %576 = vmatprep.subr.bf16.mxu1 %v625_v17  ;;  %v51_v28 = vpack.c.bf16 %v43_v27, %v42_v26  ;;  %v496_v32 = vld [vmem:[%s830_s2] ss:$0 sm:$0xff]  ;;  %596 = vmatprep.subr.bf16.mxu0 %v651_v23  ;;  %p630_p0 = scmp.ne.s32.totalorder %s489_s24, %s629_s25  ;;  %p635_p2 = scmp.lt.s32.totalorder %s629_s25, %s629_s25 }
  0x11   :  { %612 = vmatprep.mubr.msk.bf16.mxu0 %vm652_vm2, %v651_v23  ;;  %v788_v27 = vld [vmem:[%s832_s4] ss:$0 sm:$0xff] }
  0x12   :  { %561 = vmatmul.mubr.msk.bf16.gmra.mxu1 %vm75_vm0, %v47_v18  ;;  %p636_p3 = por %p635_p2, %p634_p1 }
  0x13   :  { %564 = vmatprep.mubr.msk.bf16.mxu1 %vm75_vm0, %v48_v19  ;;  %577 = vmatpush3.bf16.msra.mxu1 %v625_v17 }
  0x14   :  { %578 = vmatprep.subr.bf16.mxu1 %v626_v29  ;;  %p637_p4 = pnand %p636_p3, %p630_p0 }
  0x17   :  { %579 = vmatpush3.bf16.msra.mxu1 %v626_v29 }
  0x1a   :  { %565 = vmatmul.mubr.msk.bf16.gmra.mxu1 %vm75_vm0, %v49_v24  ;;  %v407_v24 = vld [vmem:[%s834_s6] sm:$0xff] }
  0x1b   :  { %568 = vmatprep.mubr.msk.bf16.mxu1 %vm75_vm0, %v50_v25  ;;  %v653_v25 = vmov 0  }
  0x1c   :  { %620 = vset.pattern.permute.xlu0 %v653_v25 }
  0x1d   :  { %410 = vperm.xlu0 %620, %v407_v24  }
  0x22   :  { %569 = vmatmul.mubr.msk.bf16.gmra.mxu1 %vm75_vm0, %v51_v28 }
  0xca   :  { %v558_v30 = vpop.f32.mrf.mxu1 }
  0xcb   :  { %v143_v36 = vadd.f32 %v558_v30, %v496_v32 }
  0xcc   :  { %v134_v31 = vpop.f32.mrf.mxu1 }
  0xcd   :  { %v135_v34 = vadd.f32 %v496_v32, %v134_v31  ;;  %v199_v43 = vmax.f32 %v143_v36, 0.0 }
  0xce   :  { %v559_v33 = vpop.f32.mrf.mxu1 }
  0xcf   :  { %v146_v35 = vadd.f32 %v559_v33, %v496_v32  ;;  %v197_v41 = vmax.f32 %v135_v34, 0.0 }
  0xd0   :  { %v137_v37 = vpop.f32.mrf.mxu1 }
  0xd1   :  { %v138_v38 = vadd.f32 %v496_v32, %v137_v37  ;;  %v200_v39 = vmax.f32 %v146_v35, 0.0 }
  0xd2   :  { %v562_v40 = vpop.f32.mrf.mxu1 }
  0xd3   :  { %v198_v42 = vmax.f32 %v138_v38, 0.0  ;;  %v214_v46 = vpack.c.bf16 %v200_v39, %v199_v43  ;;  %v159_v50 = vadd.f32 %v562_v40, %v496_v32 }
  0xd4   :  { %v150_v44 = vpop.f32.mrf.mxu1 }
  0xd5   :  { %v213_v45 = vpack.c.bf16 %v198_v42, %v197_v41  ;;  %v151_v48 = vadd.f32 %v496_v32, %v150_v44  ;;  %v203_v57 = vmax.f32 %v159_v50, 0.0 }
  0xd6   :  { %v563_v47 = vpop.f32.mrf.mxu1 }
  0xd7   :  { %v162_v49 = vadd.f32 %v563_v47, %v496_v32  ;;  %580 = vmatprep.mubr.msk.bf16.mxu1 %vm260_vm1, %v213_v45  ;;  %v201_v55 = vmax.f32 %v151_v48, 0.0 }
  0xd8   :  { %v153_v51 = vpop.f32.mrf.mxu1  ;;  %581 = vmatmul.mubr.msk.bf16.vlgmr.msra.gmra.mxu1 %vm260_vm1, %v214_v46 }
  0xd9   :  { %v154_v52 = vadd.f32 %v496_v32, %v153_v51  ;;  %v204_v53 = vmax.f32 %v162_v49, 0.0 }
  0xda   :  { %v566_v54 = vpop.f32.mrf.mxu1 }
  0xdb   :  { %v202_v56 = vmax.f32 %v154_v52, 0.0  ;;  %v216_v60 = vpack.c.bf16 %v204_v53, %v203_v57  ;;  %v175_v0 = vadd.f32 %v566_v54, %v496_v32 }
  0xdc   :  { %v166_v58 = vpop.f32.mrf.mxu1 }
  0xdd   :  { %v215_v59 = vpack.c.bf16 %v202_v56, %v201_v55  ;;  %v167_v62 = vadd.f32 %v496_v32, %v166_v58  ;;  %v207_v7 = vmax.f32 %v175_v0, 0.0 }
  0xde   :  { %v567_v61 = vpop.f32.mrf.mxu1 }
  0xdf   :  { %v178_v63 = vadd.f32 %v567_v61, %v496_v32  ;;  %584 = vmatprep.mubr.msk.bf16.mxu1 %vm260_vm1, %v215_v59  ;;  %v205_v5 = vmax.f32 %v167_v62, 0.0 }
  0xe0   :  { %v169_v1 = vpop.f32.mrf.mxu1  ;;  %585 = vmatmul.mubr.msk.bf16.gmra.mxu1 %vm260_vm1, %v216_v60 }
  0xe1   :  { %v170_v2 = vadd.f32 %v496_v32, %v169_v1  ;;  %v208_v3 = vmax.f32 %v178_v63, 0.0 }
  0xe2   :  { %v570_v4 = vpop.f32.mrf.mxu1 }
  0xe3   :  { %v206_v6 = vmax.f32 %v170_v2, 0.0  ;;  %v218_v10 = vpack.c.bf16 %v208_v3, %v207_v7  ;;  %v191_v14 = vadd.f32 %v570_v4, %v496_v32 }
  0xe4   :  { %v182_v8 = vpop.f32.mrf.mxu1 }
  0xe5   :  { %v217_v9 = vpack.c.bf16 %v206_v6, %v205_v5  ;;  %v183_v12 = vadd.f32 %v496_v32, %v182_v8  ;;  %v211_v20 = vmax.f32 %v191_v14, 0.0 }
  0xe6   :  { %v571_v11 = vpop.f32.mrf.mxu1 }
  0xe7   :  { %v194_v13 = vadd.f32 %v571_v11, %v496_v32  ;;  %588 = vmatprep.mubr.msk.bf16.mxu1 %vm260_vm1, %v217_v9  ;;  %v209_v18 = vmax.f32 %v183_v12, 0.0 }
  0xe8   :  { %v185_v15 = vpop.f32.mrf.mxu1  ;;  %589 = vmatmul.mubr.msk.bf16.gmra.mxu1 %vm260_vm1, %v218_v10 }
  0xe9   :  { %v186_v16 = vadd.f32 %v496_v32, %v185_v15  ;;  %v212_v17 = vmax.f32 %v194_v13, 0.0 }
  0xeb   :  { %v210_v19 = vmax.f32 %v186_v16, 0.0  ;;  %v220_v22 = vpack.c.bf16 %v212_v17, %v211_v20 }
  0xed   :  { %v219_v21 = vpack.c.bf16 %v210_v19, %v209_v18 }
  0xef   :  { %592 = vmatprep.mubr.msk.bf16.mxu1 %vm260_vm1, %v219_v21 }
  0xf0   :  { %593 = vmatmul.mubr.msk.bf16.gmra.mxu1 %vm260_vm1, %v220_v22 }
 0x198   :  { %v582_v26 = vpop.f32.mrf.mxu1 }
 0x199   :  { %v328_v29 = vadd.f32 %v582_v26, %v788_v27 }
 0x19a   :  { %v319_v28 = vpop.f32.mrf.mxu1 }
 0x19b   :  { %v320_v31 = vadd.f32 %v788_v27, %v319_v28  ;;  %v384_v34 = vmax.f32 %v328_v29, 0.0  ;;  %v406_v28 = vld [vmem:[%s833_s5] sm:$0xf]  ;;  %v411_v29 = vpop.permute.xlu0 %410 }
 0x19c   :  { %v583_v30 = vpop.f32.mrf.mxu1 }
 0x19d   :  { %v331_v32 = vadd.f32 %v583_v30, %v788_v27  ;;  %v382_v38 = vmax.f32 %v320_v31, 0.0 }
 0x19e   :  { %v322_v33 = vpop.f32.mrf.mxu1 }
 0x19f   :  { %v385_v35 = vmax.f32 %v331_v32, 0.0  ;;  %v323_v36 = vadd.f32 %v788_v27, %v322_v33 }
 0x1a0   :  { %v586_v37 = vpop.f32.mrf.mxu1 }
 0x1a1   :  { %v399_v39 = vpack.c.bf16 %v385_v35, %v384_v34  ;;  %v383_v40 = vmax.f32 %v323_v36, 0.0  ;;  %v344_v13 = vadd.f32 %v586_v37, %v788_v27 }
 0x1a2   :  { %v335_v41 = vpop.f32.mrf.mxu1 }
 0x1a3   :  { %v398_v42 = vpack.c.bf16 %v383_v40, %v382_v38  ;;  %v388_v16 = vmax.f32 %v344_v13, 0.0  ;;  %v336_v19 = vadd.f32 %v788_v27, %v335_v41  ;;  %v420_v26 = vsel %vm75_vm0, %v399_v39, 0 }
 0x1a4   :  { %v587_v43 = vpop.f32.mrf.mxu1 }
 0x1a5   :  { %v347_v11 = vadd.f32 %v587_v43, %v788_v27  ;;  %v386_v22 = vmax.f32 %v336_v19, 0.0 }
 0x1a6   :  { %v338_v44 = vpop.f32.mrf.mxu1 }
 0x1a7   :  { %v389_v14 = vmax.f32 %v347_v11, 0.0  ;;  %v339_v18 = vadd.f32 %v788_v27, %v338_v44 }
 0x1a8   :  { %v590_v45 = vpop.f32.mrf.mxu1 }
 0x1a9   :  { %v360_v1 = vadd.f32 %v590_v45, %v788_v27  ;;  %v401_v17 = vpack.c.bf16 %v389_v14, %v388_v16  ;;  %v387_v20 = vmax.f32 %v339_v18, 0.0 }
 0x1aa   :  { %v351_v46 = vpop.f32.mrf.mxu1 }
 0x1ab   :  { %v392_v4 = vmax.f32 %v360_v1, 0.0  ;;  %v352_v7 = vadd.f32 %v788_v27, %v351_v46  ;;  %v426_v21 = vsel %vm75_vm0, %v401_v17, 0  ;;  %v400_v24 = vpack.c.bf16 %v387_v20, %v386_v22 }
 0x1ac   :  { %v591_v47 = vpop.f32.mrf.mxu1 }
 0x1ad   :  { %v363_v63 = vadd.f32 %v591_v47, %v788_v27  ;;  %v390_v10 = vmax.f32 %v352_v7, 0.0  ;;  %v423_v25 = vsel %vm75_vm0, %v400_v24, 0 }
 0x1ae   :  { %v354_v48 = vpop.f32.mrf.mxu1 }
 0x1af   :  { %v393_v2 = vmax.f32 %v363_v63, 0.0  ;;  %v355_v6 = vadd.f32 %v788_v27, %v354_v48 }
 0x1b0   :  { %v594_v49 = vpop.f32.mrf.mxu1 }
 0x1b1   :  { %v376_v51 = vadd.f32 %v594_v49, %v788_v27  ;;  %v403_v5 = vpack.c.bf16 %v393_v2, %v392_v4  ;;  %v391_v8 = vmax.f32 %v355_v6, 0.0 }
 0x1b2   :  { %v367_v50 = vpop.f32.mrf.mxu1 }
 0x1b3   :  { %v396_v55 = vmax.f32 %v376_v51, 0.0  ;;  %v368_v58 = vadd.f32 %v788_v27, %v367_v50  ;;  %v432_v9 = vsel %vm75_vm0, %v403_v5, 0  ;;  %v402_v12 = vpack.c.bf16 %v391_v8, %v390_v10 }
 0x1b4   :  { %v595_v52 = vpop.f32.mrf.mxu1 }
 0x1b5   :  { %v379_v53 = vadd.f32 %v595_v52, %v788_v27  ;;  %v394_v62 = vmax.f32 %v368_v58, 0.0  ;;  %v429_v15 = vsel %vm75_vm0, %v402_v12, 0 }
 0x1b6   :  { %v370_v54 = vpop.f32.mrf.mxu1 }
 0x1b7   :  { %v397_v56 = vmax.f32 %v379_v53, 0.0  ;;  %v371_v57 = vadd.f32 %v788_v27, %v370_v54  ;;  %v417_v27 = vsel %vm75_vm0, %v398_v42, 0 }
 0x1b9   :  { %v405_v59 = vpack.c.bf16 %v397_v56, %v396_v55  ;;  %v395_v60 = vmax.f32 %v371_v57, 0.0 }
 0x1bb   :  { %v438_v61 = vsel %vm75_vm0, %v405_v59, 0  ;;  %v404_v0 = vpack.c.bf16 %v395_v60, %v394_v62 }
 0x1bc   :  { %597 = vmatpush3.bf16.xpose.msra.mxu0 %v438_v61 }
 0x1bd   :  { %598 = vmatprep.subr.bf16.mxu0 %v651_v23  ;;  %v435_v3 = vsel %vm75_vm0, %v404_v0, 0 }
 0x1c4   :  { %599 = vmatpush3.bf16.xpose.msra.mxu0 %v435_v3 }
 0x1c5   :  { %600 = vmatprep.subr.bf16.mxu0 %v651_v23 }
 0x1cc   :  { %601 = vmatpush3.bf16.xpose.msra.mxu0 %v432_v9 }
 0x1cd   :  { %602 = vmatprep.subr.bf16.mxu0 %v651_v23 }
 0x1d4   :  { %603 = vmatpush3.bf16.xpose.msra.mxu0 %v429_v15 }
 0x1d5   :  { %604 = vmatprep.subr.bf16.mxu0 %v651_v23 }
 0x1dc   :  { %605 = vmatpush3.bf16.xpose.msra.mxu0 %v426_v21 }
 0x1dd   :  { %606 = vmatprep.subr.bf16.mxu0 %v651_v23 }
 0x1e4   :  { %607 = vmatpush3.bf16.xpose.msra.mxu0 %v423_v25 }
 0x1e5   :  { %608 = vmatprep.subr.bf16.mxu0 %v651_v23 }
 0x1ec   :  { %609 = vmatpush3.bf16.xpose.msra.mxu0 %v420_v26 }
 0x1ed   :  { %610 = vmatprep.subr.bf16.mxu0 %v651_v23 }
 0x1f4   :  { %611 = vmatpush3.bf16.xpose.msra.mxu0 %v417_v27 }
 0x1fb   :  { %613 = vmatmul.mubr.msk.bf16.vlgmr.msra.gmra.mxu0 %vm75_vm0, %v406_v28 }
 0x2bb   :  { %v474_v30 = vpop.f32.mrf.mxu0 }
 0x2bc   :  { %v475_v31 = vadd.f32 %v474_v30, %v411_v29 }
 0x2bd   :  { %v614_v32 = vpop.f32.mrf.mxu0 }
 0x2be   :  { %627 = vtanh.f32 %v475_v31 }
 0x2bf   :  { %v477_v33 = vpop.f32.mrf.mxu0 }
 0x2c1   :  { %v615_v34 = vpop.f32.mrf.mxu0 }
 0x2cb   :  { %v628_v23 = vpop.eup %627 }
 0x2cc   :  { %481 = vst [vmem:[#allocation2] sm:$0xff] %v628_v23 }
 0x2cd   :  { %640 = shalt.err (!%p637_p4)
}
 0x2ce   :  { %491 = dma.vmem_to_hbm [thread:$0]  %s489_s24, 128, %s835_s7, [#allocation3]  }
 0x2cf   :  { %649 = dma.done.wait [#allocation3], 128  }
 0x2d0   :  { %650 = vsyncadd [#allocation3], 4294967168 }
 0x2d1   :  { %495 = vsyncpa [#allocation3], 1 }

</bundles_post_ra>
